<compile_context>
chip_gen: v6e
topology: v6e:2x2x1
jax: 0.10.0
libtpu: 0.0.40
codegen_flags: <defaults>
</compile_context>

<pallas_src>
import jax
import jax.numpy as jnp
from jax.experimental import pallas as pl
from jax.experimental.pallas import tpu as pltpu

# ---- small, TPU-friendly config consistent with the module's constructor ----
INPUT_SIZE = 100           # embedding vocab size
NUM_FIELDS = 8             # num_fields
EMBED_SIZE = 16            # embed_size (small)
HIDDEN_SIZE = 128          # hidden_size (small)
NUM_HIDDEN_LAYERS = 3      # num_hidden_layers (small)
OUT_DIM = 1
BATCH = 8

INPUT_DIM = NUM_FIELDS * EMBED_SIZE     # 128 (lane-dense)
VOCAB_PAD = 128                         # vocab padded to one lane tile
ONEHOT_DIM = NUM_FIELDS * VOCAB_PAD     # 1024


def deepfm_kernel(ids_ref, expand_ref, modiota_ref, wbig_ref, w1_ref, w2_ref,
                  vecs_ref, bo_ref, out_ref):
    """One batch tile of DeepFM with the embedding gather fused in.

    ids -> one-hot (MXU broadcast + VPU compare) -> one 256-wide bf16 MXU pass
    producing [x@w0 || FM aux], relu tower (2 more bf16 matmuls), one combined
    cross-lane reduction (head + FM), sigmoid, lane-dense (1, TB) store."""
    H, E = HIDDEN_SIZE, EMBED_SIZE

    # ---- fused embedding gather: build the per-field one-hot ----
    ids_f = ids_ref[...].astype(jnp.float32)                         # (TB, F)
    # broadcast each field's id across its 128-lane vocab block (tiny K=8 MXU op)
    ids_b = jnp.dot(ids_f, expand_ref[...],
                    preferred_element_type=jnp.float32)              # (TB, F*V)
    onehot = jnp.where(ids_b == modiota_ref[...], 1.0, 0.0
                       ).astype(jnp.bfloat16)                        # (TB, F*V)

    # one bf16 MXU pass = gather + first DNN layer + FM pooling + FM sum-sq
    y = jnp.dot(onehot, wbig_ref[...],
                preferred_element_type=jnp.float32)                  # (TB, 2H)

    b0 = vecs_ref[0:1, :]
    b1 = vecs_ref[1:2, :]
    b2 = vecs_ref[2:3, :]
    wo = vecs_ref[3:4, :]
    sq_mask = vecs_ref[4:5, :]      # 1.0 on lanes [0, E), else 0
    lin_mask = vecs_ref[5:6, :]     # 1.0 on lane E, else 0

    # ---- DNN tower (layer 0 already folded into the one-hot matmul) ----
    h = jnp.maximum(y[:, :H] + b0, 0.0)
    h = jnp.maximum(jnp.dot(h.astype(jnp.bfloat16), w1_ref[...],
                            preferred_element_type=jnp.float32) + b1, 0.0)
    h = jnp.maximum(jnp.dot(h.astype(jnp.bfloat16), w2_ref[...],
                            preferred_element_type=jnp.float32) + b2, 0.0)

    # ---- single combined cross-lane reduction: head + FM second order ----
    # aux lanes [0,E): S_d = sum_f e_{f,d};  lane E: -0.5 * sum_{f,d} e^2.
    aux = y[:, H:]                                                   # (TB, H)
    red = h * wo + (0.5 * aux * aux) * sq_mask + aux * lin_mask
    logits = jnp.sum(red, axis=-1) + bo_ref[0, 0]                    # (TB,)
    out_ref[0, :] = jax.nn.sigmoid(logits)                           # lane-dense


def _choose_tiling(b):
    """Return (padded_batch, batch_tile).

    Keeps the output lane dim a multiple of 128 (unmasked stores) and, when
    the batch is large enough, guarantees >= 2 grid steps so both v7x
    TensorCores get work on the "parallel" batch axis."""
    if b < 256:
        return b, b                       # single full-extent tile
    b_pad = ((b + 127) // 128) * 128
    for cand in (1024, 512, 256, 128):
        if cand * 2 <= b_pad and b_pad % cand == 0:
            return b_pad, cand
    return b, b                           # fallback: single full-extent tile


def init_params(key):
    ks = jax.random.split(key, 16)
    p = {}
    p["embed"] = 0.05 * jax.random.normal(
        ks[0], (INPUT_SIZE, EMBED_SIZE), jnp.float32)
    p["w0"] = 0.05 * jax.random.normal(ks[1], (INPUT_DIM, HIDDEN_SIZE), jnp.float32)
    p["b0"] = 0.01 * jax.random.normal(ks[2], (1, HIDDEN_SIZE), jnp.float32)
    p["w1"] = 0.05 * jax.random.normal(ks[3], (HIDDEN_SIZE, HIDDEN_SIZE), jnp.float32)
    p["b1"] = 0.01 * jax.random.normal(ks[4], (1, HIDDEN_SIZE), jnp.float32)
    p["w2"] = 0.05 * jax.random.normal(ks[5], (HIDDEN_SIZE, HIDDEN_SIZE), jnp.float32)
    p["b2"] = 0.01 * jax.random.normal(ks[6], (1, HIDDEN_SIZE), jnp.float32)
    p["wo"] = 0.05 * jax.random.normal(ks[7], (HIDDEN_SIZE, OUT_DIM), jnp.float32)
    p["bo"] = 0.01 * jax.random.normal(ks[8], (1, OUT_DIM), jnp.float32)
    return p


@jax.jit
def deepfm_forward(input_ids, params):
    b = input_ids.shape[0]
    f, e, h, v = NUM_FIELDS, EMBED_SIZE, HIDDEN_SIZE, VOCAB_PAD

    b_pad, tb = _choose_tiling(b)
    ids = input_ids.astype(jnp.int32)
    if b_pad != b:
        ids = jnp.pad(ids, ((0, b_pad - b), (0, 0)))   # id 0 is a valid row

    # ---- precomputed fused tables (parameter-sized, negligible to build) ----
    embed_pad = jnp.pad(params["embed"],
                        ((0, v - INPUT_SIZE), (0, 0)))                 # (V, E)
    w0_r = params["w0"].reshape(f, e, h)
    w0_eff = jnp.einsum("ve,feh->fvh", embed_pad, w0_r).reshape(f * v, h)
    p_tab = jnp.tile(embed_pad, (f, 1))                                # (FV, E)
    q_col = -0.5 * jnp.tile(
        jnp.sum(embed_pad * embed_pad, axis=1, keepdims=True), (f, 1))  # (FV, 1)
    w_aux = jnp.concatenate(
        [p_tab, q_col, jnp.zeros((f * v, h - e - 1), jnp.float32)], axis=1)
    wbig = jnp.concatenate([w0_eff, w_aux], axis=1).astype(jnp.bfloat16)  # (FV, 2H)

    expand = jnp.repeat(jnp.eye(f, dtype=jnp.float32), v, axis=1)      # (F, FV)
    modiota = jnp.tile(jnp.arange(v, dtype=jnp.float32), f)[None, :]   # (1, FV)

    lane = jnp.arange(h)
    sq_mask = (lane < e).astype(jnp.float32)[None, :]
    lin_mask = (lane == e).astype(jnp.float32)[None, :]
    vecs = jnp.concatenate(
        [params["b0"], params["b1"], params["b2"],
         params["wo"].reshape(1, h), sq_mask, lin_mask,
         jnp.zeros((2, h), jnp.float32)], axis=0)                      # (8, H)

    w1 = params["w1"].astype(jnp.bfloat16)
    w2 = params["w2"].astype(jnp.bfloat16)

    def resident(shape):
        nd = len(shape)
        return pl.BlockSpec(shape, lambda i, _nd=nd: (0,) * _nd)

    in_specs = [
        pl.BlockSpec((tb, f), lambda i: (i, 0)),           # ids (batch-tiled)
        resident(expand.shape),
        resident(modiota.shape),
        resident(wbig.shape),
        resident(w1.shape),
        resident(w2.shape),
        resident(vecs.shape),
        pl.BlockSpec(memory_space=pltpu.MemorySpace.SMEM),  # bo scalar
    ]

    out = pl.pallas_call(
        deepfm_kernel,
        out_shape=jax.ShapeDtypeStruct((1, b_pad), jnp.float32),  # lane-dense
        grid=(b_pad // tb,),
        in_specs=in_specs,
        out_specs=pl.BlockSpec((1, tb), lambda i: (0, i)),
        compiler_params=pltpu.CompilerParams(
            dimension_semantics=("parallel",),
            vmem_limit_bytes=48 * 1024 * 1024),
    )(ids, expand, modiota, wbig, w1, w2, vecs, params["bo"])

    # (1, B_pad) lane-dense slab -> (B,) (== torch.squeeze of (B, 1) logits)
    return out[0, :b]


def deepfm_reference(input_ids, params):
    """Pure-JAX f32 reference of the PyTorch forward (eval mode)."""
    feat = jnp.take(params["embed"], input_ids, axis=0)               # (B, F, E)
    x = feat.reshape(input_ids.shape[0], -1)
    h = jax.nn.relu(x @ params["w0"] + params["b0"])
    h = jax.nn.relu(h @ params["w1"] + params["b1"])
    h = jax.nn.relu(h @ params["w2"] + params["b2"])
    head = h @ params["wo"] + params["bo"]                            # (B, 1)
    sum_f = jnp.sum(feat, axis=1)
    sum_sq = jnp.sum(feat * feat, axis=1)
    fm = 0.5 * jnp.sum(sum_f * sum_f - sum_sq, axis=-1, keepdims=True)
    return jax.nn.sigmoid(jnp.squeeze(head + fm, axis=-1))


if __name__ == "__main__":
    key = jax.random.PRNGKey(0)
    pkey, dkey, dkey2 = jax.random.split(key, 3)
    params = init_params(pkey)

    # ---- primary small-shape check ----
    ids_small = jax.random.randint(
        dkey, (BATCH, NUM_FIELDS), 0, INPUT_SIZE, dtype=jnp.int32)
    out = jax.block_until_ready(deepfm_forward(ids_small, params))
    assert out.shape == (BATCH,)
    assert bool(jnp.all(jnp.isfinite(out)))
    ref = deepfm_reference(ids_small, params)
    assert bool(jnp.allclose(out, ref, rtol=1e-2, atol=1e-2)), "mismatch (B=8)"

    # ---- secondary check: batch padding + multi-tile grid path ----
    big_b = 300
    ids_big = jax.random.randint(
        dkey2, (big_b, NUM_FIELDS), 0, INPUT_SIZE, dtype=jnp.int32)
    out_big = jax.block_until_ready(deepfm_forward(ids_big, params))
    assert out_big.shape == (big_b,)
    ref_big = deepfm_reference(ids_big, params)
    assert bool(jnp.allclose(out_big, ref_big, rtol=1e-2, atol=1e-2)), \
        "mismatch (B=300)"

    print("KERNEL_OK")
</pallas_src>

<mosaic_0001>
module attributes {stable_mosaic.version = 11 : i64} {
  func.func @deepfm_kernel(%arg0: i32, %arg1: memref<8x8xi32, #tpu.memory_space<vmem>>, %arg2: memref<8x1024xf32, #tpu.memory_space<vmem>>, %arg3: memref<1x1024xf32, #tpu.memory_space<vmem>>, %arg4: memref<1024x256xbf16, #tpu.memory_space<vmem>>, %arg5: memref<128x128xbf16, #tpu.memory_space<vmem>>, %arg6: memref<128x128xbf16, #tpu.memory_space<vmem>>, %arg7: memref<8x128xf32, #tpu.memory_space<vmem>>, %arg8: memref<1x1xf32, #tpu.memory_space<smem>>, %arg9: memref<1x8xf32, #tpu.memory_space<vmem>>) attributes {dimension_semantics = [#tpu.dimension_semantics<parallel>], iteration_bounds = array<i64: 1>, scalar_prefetch = 0 : i64, scratch_operands = 0 : i64, tpu.core_type = #tpu.core_type<tc>, window_params = [{transform_indices = @transform_0, window_bounds = array<i64: 8, 8>}, {pipeline_mode = #tpu.pipeline_mode<synchronous>, transform_indices = @transform_1, window_bounds = array<i64: 8, 1024>}, {pipeline_mode = #tpu.pipeline_mode<synchronous>, transform_indices = @transform_2, window_bounds = array<i64: 1, 1024>}, {pipeline_mode = #tpu.pipeline_mode<synchronous>, transform_indices = @transform_3, window_bounds = array<i64: 1024, 256>}, {pipeline_mode = #tpu.pipeline_mode<synchronous>, transform_indices = @transform_4, window_bounds = array<i64: 128, 128>}, {pipeline_mode = #tpu.pipeline_mode<synchronous>, transform_indices = @transform_5, window_bounds = array<i64: 128, 128>}, {pipeline_mode = #tpu.pipeline_mode<synchronous>, transform_indices = @transform_6, window_bounds = array<i64: 8, 128>}, {transform_indices = @transform_7, window_bounds = array<i64: 1, 1>}, {transform_indices = @transform_8, window_bounds = array<i64: 1, 8>}]} {
    %c0 = arith.constant 0 : index
    %c0_0 = arith.constant 0 : index
    %0 = vector.load %arg1[%c0, %c0_0] : memref<8x8xi32, #tpu.memory_space<vmem>>, vector<8x8xi32>
    %1 = arith.sitofp %0 : vector<8x8xi32> to vector<8x8xf32>
    %c0_1 = arith.constant 0 : index
    %c0_2 = arith.constant 0 : index
    %2 = vector.load %arg2[%c0_1, %c0_2] : memref<8x1024xf32, #tpu.memory_space<vmem>>, vector<8x1024xf32>
    %cst = arith.constant dense<0.000000e+00> : vector<8x1024xf32>
    %3 = tpu.matmul %1, %2, %cst {dimension_numbers = #tpu.dot_dimension_numbers<[1], [0], [0], [1], [0, 0, 1, 1], [], []>} : vector<8x8xf32>, vector<8x1024xf32>, vector<8x1024xf32> -> vector<8x1024xf32>
    %c0_3 = arith.constant 0 : index
    %c0_4 = arith.constant 0 : index
    %4 = vector.load %arg3[%c0_3, %c0_4] : memref<1x1024xf32, #tpu.memory_space<vmem>>, vector<1x1024xf32>
    %5 = vector.broadcast %4 : vector<1x1024xf32> to vector<8x1024xf32>
    %6 = arith.cmpf oeq, %3, %5 : vector<8x1024xf32>
    %cst_5 = arith.constant 1.000000e+00 : f32
    %cst_6 = arith.constant 0.000000e+00 : f32
    %7 = vector.broadcast %cst_5 : f32 to vector<8x1024xf32>
    %8 = vector.broadcast %cst_6 : f32 to vector<8x1024xf32>
    %9 = arith.select %6, %7, %8 : vector<8x1024xi1>, vector<8x1024xf32>
    %10 = arith.truncf %9 : vector<8x1024xf32> to vector<8x1024xbf16>
    %c0_7 = arith.constant 0 : index
    %c0_8 = arith.constant 0 : index
    %11 = vector.load %arg4[%c0_7, %c0_8] : memref<1024x256xbf16, #tpu.memory_space<vmem>>, vector<1024x256xbf16>
    %cst_9 = arith.constant dense<0.000000e+00> : vector<8x256xf32>
    %12 = tpu.matmul %10, %11, %cst_9 {dimension_numbers = #tpu.dot_dimension_numbers<[1], [0], [0], [1], [0, 0, 1, 1], [], []>} : vector<8x1024xbf16>, vector<1024x256xbf16>, vector<8x256xf32> -> vector<8x256xf32>
    %c0_10 = arith.constant 0 : index
    %c0_11 = arith.constant 0 : index
    %13 = vector.load %arg7[%c0_10, %c0_11] : memref<8x128xf32, #tpu.memory_space<vmem>>, vector<1x128xf32>
    %c1 = arith.constant 1 : index
    %c0_12 = arith.constant 0 : index
    %14 = vector.load %arg7[%c1, %c0_12] : memref<8x128xf32, #tpu.memory_space<vmem>>, vector<1x128xf32>
    %c2 = arith.constant 2 : index
    %c0_13 = arith.constant 0 : index
    %15 = vector.load %arg7[%c2, %c0_13] : memref<8x128xf32, #tpu.memory_space<vmem>>, vector<1x128xf32>
    %c3 = arith.constant 3 : index
    %c0_14 = arith.constant 0 : index
    %16 = vector.load %arg7[%c3, %c0_14] : memref<8x128xf32, #tpu.memory_space<vmem>>, vector<1x128xf32>
    %c4 = arith.constant 4 : index
    %c0_15 = arith.constant 0 : index
    %17 = vector.load %arg7[%c4, %c0_15] : memref<8x128xf32, #tpu.memory_space<vmem>>, vector<1x128xf32>
    %c5 = arith.constant 5 : index
    %c0_16 = arith.constant 0 : index
    %18 = vector.load %arg7[%c5, %c0_16] : memref<8x128xf32, #tpu.memory_space<vmem>>, vector<1x128xf32>
    %19 = vector.extract_strided_slice %12 {offsets = [0, 0], sizes = [8, 128], strides = [1, 1]} : vector<8x256xf32> to vector<8x128xf32>
    %20 = vector.broadcast %13 : vector<1x128xf32> to vector<8x128xf32>
    %21 = arith.addf %19, %20 : vector<8x128xf32>
    %cst_17 = arith.constant 0.000000e+00 : f32
    %22 = vector.broadcast %cst_17 : f32 to vector<8x128xf32>
    %23 = arith.maximumf %21, %22 : vector<8x128xf32>
    %24 = arith.truncf %23 : vector<8x128xf32> to vector<8x128xbf16>
    %c0_18 = arith.constant 0 : index
    %c0_19 = arith.constant 0 : index
    %25 = vector.load %arg5[%c0_18, %c0_19] : memref<128x128xbf16, #tpu.memory_space<vmem>>, vector<128x128xbf16>
    %cst_20 = arith.constant dense<0.000000e+00> : vector<8x128xf32>
    %26 = tpu.matmul %24, %25, %cst_20 {dimension_numbers = #tpu.dot_dimension_numbers<[1], [0], [0], [1], [0, 0, 1, 1], [], []>} : vector<8x128xbf16>, vector<128x128xbf16>, vector<8x128xf32> -> vector<8x128xf32>
    %27 = vector.broadcast %14 : vector<1x128xf32> to vector<8x128xf32>
    %28 = arith.addf %26, %27 : vector<8x128xf32>
    %cst_21 = arith.constant 0.000000e+00 : f32
    %29 = vector.broadcast %cst_21 : f32 to vector<8x128xf32>
    %30 = arith.maximumf %28, %29 : vector<8x128xf32>
    %31 = arith.truncf %30 : vector<8x128xf32> to vector<8x128xbf16>
    %c0_22 = arith.constant 0 : index
    %c0_23 = arith.constant 0 : index
    %32 = vector.load %arg6[%c0_22, %c0_23] : memref<128x128xbf16, #tpu.memory_space<vmem>>, vector<128x128xbf16>
    %cst_24 = arith.constant dense<0.000000e+00> : vector<8x128xf32>
    %33 = tpu.matmul %31, %32, %cst_24 {dimension_numbers = #tpu.dot_dimension_numbers<[1], [0], [0], [1], [0, 0, 1, 1], [], []>} : vector<8x128xbf16>, vector<128x128xbf16>, vector<8x128xf32> -> vector<8x128xf32>
    %34 = vector.broadcast %15 : vector<1x128xf32> to vector<8x128xf32>
    %35 = arith.addf %33, %34 : vector<8x128xf32>
    %cst_25 = arith.constant 0.000000e+00 : f32
    %36 = vector.broadcast %cst_25 : f32 to vector<8x128xf32>
    %37 = arith.maximumf %35, %36 : vector<8x128xf32>
    %38 = vector.extract_strided_slice %12 {offsets = [0, 128], sizes = [8, 128], strides = [1, 1]} : vector<8x256xf32> to vector<8x128xf32>
    %39 = vector.broadcast %16 : vector<1x128xf32> to vector<8x128xf32>
    %40 = arith.mulf %37, %39 : vector<8x128xf32>
    %cst_26 = arith.constant 5.000000e-01 : f32
    %41 = vector.broadcast %cst_26 : f32 to vector<8x128xf32>
    %42 = arith.mulf %41, %38 : vector<8x128xf32>
    %43 = arith.mulf %42, %38 : vector<8x128xf32>
    %44 = vector.broadcast %17 : vector<1x128xf32> to vector<8x128xf32>
    %45 = arith.mulf %43, %44 : vector<8x128xf32>
    %46 = arith.addf %40, %45 : vector<8x128xf32>
    %47 = vector.broadcast %18 : vector<1x128xf32> to vector<8x128xf32>
    %48 = arith.mulf %38, %47 : vector<8x128xf32>
    %49 = arith.addf %46, %48 : vector<8x128xf32>
    %cst_27 = arith.constant dense<0.000000e+00> : vector<8xf32>
    %50 = vector.multi_reduction <add>, %49, %cst_27 [1] : vector<8x128xf32> to vector<8xf32>
    %c0_28 = arith.constant 0 : index
    %c0_29 = arith.constant 0 : index
    %51 = memref.load %arg8[%c0_28, %c0_29] : memref<1x1xf32, #tpu.memory_space<smem>>
    %52 = vector.broadcast %51 : f32 to vector<8xf32>
    %53 = arith.addf %50, %52 : vector<8xf32>
    %54 = arith.negf %53 : vector<8xf32>
    %55 = math.exp %54 : vector<8xf32>
    %cst_30 = arith.constant 1.000000e+00 : f32
    %56 = vector.broadcast %cst_30 : f32 to vector<8xf32>
    %57 = arith.addf %56, %55 : vector<8xf32>
    %58 = arith.divf %56, %57 : vector<8xf32>
    %c0_31 = arith.constant 0 : index
    %c0_32 = arith.constant 0 : index
    %59 = vector.load %arg9[%c0_31, %c0_32] : memref<1x8xf32, #tpu.memory_space<vmem>>, vector<1x8xf32>
    %60 = vector.shape_cast %59 : vector<1x8xf32> to vector<8xf32>
    %61 = vector.shape_cast %58 : vector<8xf32> to vector<1x8xf32>
    tpu.vector_store %arg9[%c0_31, %c0_32], %61 {strides = array<i32>} : memref<1x8xf32, #tpu.memory_space<vmem>>, vector<1x8xf32>,
    return
  }
  func.func @transform_0(%arg0: i32) -> (i32, i32) {
    %c0_i32 = arith.constant 0 : i32
    %c0_i32_0 = arith.constant 0 : i32
    return %arg0, %c0_i32 : i32, i32
  }
  func.func @transform_1(%arg0: i32) -> (i32, i32) {
    %c0_i32 = arith.constant 0 : i32
    %c0_i32_0 = arith.constant 0 : i32
    %c0_i32_1 = arith.constant 0 : i32
    return %c0_i32, %c0_i32_0 : i32, i32
  }
  func.func @transform_2(%arg0: i32) -> (i32, i32) {
    %c0_i32 = arith.constant 0 : i32
    %c0_i32_0 = arith.constant 0 : i32
    %c0_i32_1 = arith.constant 0 : i32
    return %c0_i32, %c0_i32_0 : i32, i32
  }
  func.func @transform_3(%arg0: i32) -> (i32, i32) {
    %c0_i32 = arith.constant 0 : i32
    %c0_i32_0 = arith.constant 0 : i32
    %c0_i32_1 = arith.constant 0 : i32
    return %c0_i32, %c0_i32_0 : i32, i32
  }
  func.func @transform_4(%arg0: i32) -> (i32, i32) {
    %c0_i32 = arith.constant 0 : i32
    %c0_i32_0 = arith.constant 0 : i32
    %c0_i32_1 = arith.constant 0 : i32
    return %c0_i32, %c0_i32_0 : i32, i32
  }
  func.func @transform_5(%arg0: i32) -> (i32, i32) {
    %c0_i32 = arith.constant 0 : i32
    %c0_i32_0 = arith.constant 0 : i32
    %c0_i32_1 = arith.constant 0 : i32
    return %c0_i32, %c0_i32_0 : i32, i32
  }
  func.func @transform_6(%arg0: i32) -> (i32, i32) {
    %c0_i32 = arith.constant 0 : i32
    %c0_i32_0 = arith.constant 0 : i32
    %c0_i32_1 = arith.constant 0 : i32
    return %c0_i32, %c0_i32_0 : i32, i32
  }
  func.func @transform_7(%arg0: i32) -> (i32, i32) {
    %c0_i32 = arith.constant 0 : i32
    %c0_i32_0 = arith.constant 0 : i32
    %c0_i32_1 = arith.constant 0 : i32
    return %c0_i32, %c0_i32_0 : i32, i32
  }
  func.func @transform_8(%arg0: i32) -> (i32, i32) {
    %c0_i32 = arith.constant 0 : i32
    %c0_i32_0 = arith.constant 0 : i32
    return %c0_i32, %arg0 : i32, i32
  }
}

</mosaic_0001>

<bundles_post_ra>
// kernel: deepfm_forward.1
= control target key start
LH: loop header
LB: loop body
LE: loop exit
PB: predicated region body
PF: predicated region fallthrough
CT: control target
= control target key end

     0   :  { %vm42_vm0 = vcmask 64512   ;;  %v2081_v5 = vmov 0.0   ;;  %s2691_s0 = inlined_call_operand.vmem [shape: s32[8,8], index: 0, kind: input, shape index: {}]   ;;  %s2692_s1 = inlined_call_operand.vmem [shape: f32[8,1024], index: 1, kind: input, shape index: {}]   ;;  %s2693_s2 = inlined_call_operand.vmem [shape: f32[1,1024], index: 2, kind: input, shape index: {}]   ;;  %s2694_s3 = inlined_call_operand.vmem [shape: bf16[1024,256], index: 3, kind: input, shape index: {}]   ;;  %s2695_s4 = inlined_call_operand.vmem [shape: bf16[128,128], index: 4, kind: input, shape index: {}]   ;;  %s2696_s5 = inlined_call_operand.vmem [shape: bf16[128,128], index: 5, kind: input, shape index: {}]   ;;  %s2697_s6 = inlined_call_operand.vmem [shape: f32[8,128], index: 6, kind: input, shape index: {}]   ;;  %s2698_s7 = inlined_call_operand.<no memory space> [shape: f32[1,1], index: 7, kind: input, shape index: {}]   ;;  %s2699_s8 = inlined_call_operand.hbm [shape: f32[1,8], index: 8, kind: output, shape index: {}]  }
   0x1   :  { %v35_v0 = vld [vmem:[%s2692_s1 + $0x8] sm:$0xff]  ;;  %v37_v1 = vld [vmem:[%s2692_s1 + $0x18] sm:$0xff]  ;;  %v34_v2 = vld [vmem:[%s2692_s1] sm:$0xff]  ;;  %110 = vmatprep.mubr.f32.mxu0 %v2081_v5  ;;  %181 = vmatprep.mubr.f32.mxu1 %v2081_v5 }
   0x2   :  { %76 = vmatprep.subr.mxu0 %v35_v0  ;;  %147 = vmatprep.subr.mxu1 %v37_v1  ;;  %v36_v3 = vld [vmem:[%s2692_s1 + $0x10] sm:$0xff]  ;;  %v32_v4 = vld [vmem:[%s2691_s0] sm:$0xff]  ;;  %v39_v7 = vld [vmem:[%s2692_s1 + $0x28] sm:$0xff] }
   0x3   :  { %77 = vmatpush1.msra.mxu0 %v34_v2  ;;  %v33_v6 = vcvt.s32.f32 %v32_v4  ;;  %v38_v8 = vld [vmem:[%s2692_s1 + $0x20] sm:$0xff]  ;;  %148 = vmatpush1.msra.mxu1 %v36_v3  ;;  %v41_v9 = vld [vmem:[%s2692_s1 + $0x38] sm:$0xff]  ;;  %v40_v10 = vld [vmem:[%s2692_s1 + $0x30] sm:$0xff] }
   0x4   :  { %218 = vmatprep.subr.mxu0 %v39_v7  ;;  %v1849_v11 = vld [vmem:[%s2694_s3 + $0x74] ss:$8 sps:$4 sm:$0xff]   ;;  %289 = vmatprep.subr.mxu1 %v41_v9  ;;  %v1847_v13 = vld [vmem:[%s2694_s3 + $0x70] ss:$8 sps:$4 sm:$0xff]   ;;  %v1855_v15 = vld [vmem:[%s2694_s3 + $0x64] ss:$8 sps:$4 sm:$0xff]  }
   0x5   :  { %1614 = vmatmul.mubr.msk.f32.vlgmr.msra.gmra.mxu0 %vm42_vm0, %v33_v6  ;;  %1615 = vmatmul.mubr.msk.f32.vlgmr.msra.gmra.mxu1 %vm42_vm0, %v33_v6  ;;  %v1852_v12 = vld [vmem:[%s2694_s3 + $0x174] ss:$8 sps:$4 sm:$0xff]   ;;  %v1850_v14 = vld [vmem:[%s2694_s3 + $0x170] ss:$8 sps:$4 sm:$0xff]   ;;  %v1858_v16 = vld [vmem:[%s2694_s3 + $0x164] ss:$8 sps:$4 sm:$0xff]  }
   0x6   :  { %252 = vmatprep.mubr.f32.mxu0 %v2081_v5  ;;  %219 = vmatpush1.msra.mxu0 %v38_v8  ;;  %v1853_v17 = vld [vmem:[%s2694_s3 + $0x60] ss:$8 sps:$4 sm:$0xff]   ;;  %v1861_v19 = vld [vmem:[%s2694_s3 + $0x54] ss:$8 sps:$4 sm:$0xff]   ;;  %v1859_v21 = vld [vmem:[%s2694_s3 + $0x50] ss:$8 sps:$4 sm:$0xff]  }
   0x7   :  { %290 = vmatpush1.msra.mxu1 %v40_v10  ;;  %323 = vmatprep.mubr.f32.mxu1 %v2081_v5  ;;  %v1856_v18 = vld [vmem:[%s2694_s3 + $0x160] ss:$8 sps:$4 sm:$0xff]   ;;  %v1864_v20 = vld [vmem:[%s2694_s3 + $0x154] ss:$8 sps:$4 sm:$0xff]   ;;  %v1862_v22 = vld [vmem:[%s2694_s3 + $0x150] ss:$8 sps:$4 sm:$0xff]  }
   0x8   :  { %1164 = vmatprep.subr.bf16.mxu0 %v1849_v11  ;;  %1205 = vmatprep.subr.bf16.mxu1 %v1852_v12  ;;  %v1867_v23 = vld [vmem:[%s2694_s3 + $0x44] ss:$8 sps:$4 sm:$0xff]   ;;  %v1865_v25 = vld [vmem:[%s2694_s3 + $0x40] ss:$8 sps:$4 sm:$0xff]   ;;  %v1873_v27 = vld [vmem:[%s2694_s3 + $0x34] ss:$8 sps:$4 sm:$0xff]  }
   0x9   :  { %1616 = vmatmul.mubr.msk.f32.vlgmr.msra.gmra.mxu0 %vm42_vm0, %v33_v6  ;;  %1617 = vmatmul.mubr.msk.f32.vlgmr.msra.gmra.mxu1 %vm42_vm0, %v33_v6  ;;  %v1870_v24 = vld [vmem:[%s2694_s3 + $0x144] ss:$8 sps:$4 sm:$0xff]   ;;  %v1868_v26 = vld [vmem:[%s2694_s3 + $0x140] ss:$8 sps:$4 sm:$0xff]   ;;  %v1876_v28 = vld [vmem:[%s2694_s3 + $0x134] ss:$8 sps:$4 sm:$0xff]  }
   0xa   :  { %1165 = vmatpush1.bf16.msra.mxu0 %v1847_v13  ;;  %1206 = vmatpush1.bf16.msra.mxu1 %v1850_v14  ;;  %v1871_v29 = vld [vmem:[%s2694_s3 + $0x30] ss:$8 sps:$4 sm:$0xff]   ;;  %v1879_v31 = vld [vmem:[%s2694_s3 + $0x24] ss:$8 sps:$4 sm:$0xff]   ;;  %v1877_v33 = vld [vmem:[%s2694_s3 + $0x20] ss:$8 sps:$4 sm:$0xff]  }
   0xb   :  { %1166 = vmatprep.subr.bf16.mxu0 %v1855_v15  ;;  %1207 = vmatprep.subr.bf16.mxu1 %v1858_v16  ;;  %v1874_v30 = vld [vmem:[%s2694_s3 + $0x130] ss:$8 sps:$4 sm:$0xff]   ;;  %v1882_v32 = vld [vmem:[%s2694_s3 + $0x124] ss:$8 sps:$4 sm:$0xff]   ;;  %v1880_v34 = vld [vmem:[%s2694_s3 + $0x120] ss:$8 sps:$4 sm:$0xff]  }
   0xc   :  { %v1885_v35 = vld [vmem:[%s2694_s3 + $0x14] ss:$8 sps:$4 sm:$0xff]   ;;  %v1883_v37 = vld [vmem:[%s2694_s3 + $0x10] ss:$8 sps:$4 sm:$0xff]   ;;  %v1891_v39 = vld [vmem:[%s2694_s3 + $0x4] ss:$8 sps:$4 sm:$0xff]  }
   0xd   :  { %v1888_v36 = vld [vmem:[%s2694_s3 + $0x114] ss:$8 sps:$4 sm:$0xff]   ;;  %v1886_v38 = vld [vmem:[%s2694_s3 + $0x110] ss:$8 sps:$4 sm:$0xff]   ;;  %v1894_v40 = vld [vmem:[%s2694_s3 + $0x104] ss:$8 sps:$4 sm:$0xff]  }
   0xe   :  { %1167 = vmatpush1.bf16.msra.mxu0 %v1853_v17  ;;  %1208 = vmatpush1.bf16.msra.mxu1 %v1856_v18  ;;  %v1889_v41 = vld [vmem:[%s2694_s3] ss:$8 sps:$4 sm:$0xff]   ;;  %v1897_v43 = vld [vmem:[%s2694_s3 + $0xf4] ss:$8 sps:$4 sm:$0xff]   ;;  %v1895_v45 = vld [vmem:[%s2694_s3 + $0xf0] ss:$8 sps:$4 sm:$0xff]  }
   0xf   :  { %1168 = vmatprep.subr.bf16.mxu0 %v1861_v19  ;;  %1209 = vmatprep.subr.bf16.mxu1 %v1864_v20  ;;  %v1892_v42 = vld [vmem:[%s2694_s3 + $0x100] ss:$8 sps:$4 sm:$0xff]   ;;  %v1900_v44 = vld [vmem:[%s2694_s3 + $0x1f4] ss:$8 sps:$4 sm:$0xff]   ;;  %v1898_v46 = vld [vmem:[%s2694_s3 + $0x1f0] ss:$8 sps:$4 sm:$0xff]  }
  0x10   :  { %v1903_v47 = vld [vmem:[%s2694_s3 + $0xe4] ss:$8 sps:$4 sm:$0xff]   ;;  %v1901_v49 = vld [vmem:[%s2694_s3 + $0xe0] ss:$8 sps:$4 sm:$0xff]   ;;  %v1909_v51 = vld [vmem:[%s2694_s3 + $0xd4] ss:$8 sps:$4 sm:$0xff]  }
  0x11   :  { %v1906_v48 = vld [vmem:[%s2694_s3 + $0x1e4] ss:$8 sps:$4 sm:$0xff]   ;;  %v1904_v50 = vld [vmem:[%s2694_s3 + $0x1e0] ss:$8 sps:$4 sm:$0xff]   ;;  %v1912_v52 = vld [vmem:[%s2694_s3 + $0x1d4] ss:$8 sps:$4 sm:$0xff]  }
  0x12   :  { %1169 = vmatpush1.bf16.msra.mxu0 %v1859_v21  ;;  %1210 = vmatpush1.bf16.msra.mxu1 %v1862_v22  ;;  %v1907_v53 = vld [vmem:[%s2694_s3 + $0xd0] ss:$8 sps:$4 sm:$0xff]   ;;  %v1915_v55 = vld [vmem:[%s2694_s3 + $0xc4] ss:$8 sps:$4 sm:$0xff]   ;;  %v1913_v57 = vld [vmem:[%s2694_s3 + $0xc0] ss:$8 sps:$4 sm:$0xff]  }
  0x13   :  { %1170 = vmatprep.subr.bf16.mxu0 %v1867_v23  ;;  %1211 = vmatprep.subr.bf16.mxu1 %v1870_v24  ;;  %v1910_v54 = vld [vmem:[%s2694_s3 + $0x1d0] ss:$8 sps:$4 sm:$0xff]   ;;  %v1918_v56 = vld [vmem:[%s2694_s3 + $0x1c4] ss:$8 sps:$4 sm:$0xff]   ;;  %v1916_v58 = vld [vmem:[%s2694_s3 + $0x1c0] ss:$8 sps:$4 sm:$0xff]  }
  0x14   :  { %v1921_v59 = vld [vmem:[%s2694_s3 + $0xb4] ss:$8 sps:$4 sm:$0xff]   ;;  %v1919_v61 = vld [vmem:[%s2694_s3 + $0xb0] ss:$8 sps:$4 sm:$0xff]   ;;  %v1927_v63 = vld [vmem:[%s2694_s3 + $0xa4] ss:$8 sps:$4 sm:$0xff]  }
  0x15   :  { %v1924_v60 = vld [vmem:[%s2694_s3 + $0x1b4] ss:$8 sps:$4 sm:$0xff]   ;;  %v1922_v62 = vld [vmem:[%s2694_s3 + $0x1b0] ss:$8 sps:$4 sm:$0xff]   ;;  %v1930_v0 = vld [vmem:[%s2694_s3 + $0x1a4] ss:$8 sps:$4 sm:$0xff]  }
  0x16   :  { %1171 = vmatpush1.bf16.msra.mxu0 %v1865_v25  ;;  %1212 = vmatpush1.bf16.msra.mxu1 %v1868_v26  ;;  %v1925_v1 = vld [vmem:[%s2694_s3 + $0xa0] ss:$8 sps:$4 sm:$0xff]   ;;  %v1933_v3 = vld [vmem:[%s2694_s3 + $0x94] ss:$8 sps:$4 sm:$0xff]   ;;  %v1931_v6 = vld [vmem:[%s2694_s3 + $0x90] ss:$8 sps:$4 sm:$0xff]  }
  0x17   :  { %1172 = vmatprep.subr.bf16.mxu0 %v1873_v27  ;;  %1213 = vmatprep.subr.bf16.mxu1 %v1876_v28  ;;  %v1928_v2 = vld [vmem:[%s2694_s3 + $0x1a0] ss:$8 sps:$4 sm:$0xff]   ;;  %v1936_v4 = vld [vmem:[%s2694_s3 + $0x194] ss:$8 sps:$4 sm:$0xff]   ;;  %v1934_v7 = vld [vmem:[%s2694_s3 + $0x190] ss:$8 sps:$4 sm:$0xff]  }
  0x18   :  { %v1939_v8 = vld [vmem:[%s2694_s3 + $0x84] ss:$8 sps:$4 sm:$0xff]   ;;  %v1937_v10 = vld [vmem:[%s2694_s3 + $0x80] ss:$8 sps:$4 sm:$0xff]   ;;  %v1945_v12 = vld [vmem:[%s2694_s3 + $0x274] ss:$8 sps:$4 sm:$0xff]  }
  0x19   :  { %v1942_v9 = vld [vmem:[%s2694_s3 + $0x184] ss:$8 sps:$4 sm:$0xff]   ;;  %v1940_v11 = vld [vmem:[%s2694_s3 + $0x180] ss:$8 sps:$4 sm:$0xff]   ;;  %v1948_v13 = vld [vmem:[%s2694_s3 + $0x374] ss:$8 sps:$4 sm:$0xff]  }
  0x1a   :  { %1173 = vmatpush1.bf16.msra.mxu0 %v1871_v29  ;;  %1214 = vmatpush1.bf16.msra.mxu1 %v1874_v30 }
  0x1b   :  { %1174 = vmatprep.subr.bf16.mxu0 %v1879_v31  ;;  %1215 = vmatprep.subr.bf16.mxu1 %v1882_v32 }
  0x1e   :  { %1175 = vmatpush1.bf16.msra.mxu0 %v1877_v33  ;;  %1216 = vmatpush1.bf16.msra.mxu1 %v1880_v34 }
  0x1f   :  { %1176 = vmatprep.subr.bf16.mxu0 %v1885_v35  ;;  %1217 = vmatprep.subr.bf16.mxu1 %v1888_v36 }
  0x22   :  { %1177 = vmatpush1.bf16.msra.mxu0 %v1883_v37  ;;  %1218 = vmatpush1.bf16.msra.mxu1 %v1886_v38 }
  0x23   :  { %1178 = vmatprep.subr.bf16.mxu0 %v1891_v39  ;;  %1219 = vmatprep.subr.bf16.mxu1 %v1894_v40 }
  0x26   :  { %1179 = vmatpush1.bf16.msra.mxu0 %v1889_v41  ;;  %1220 = vmatpush1.bf16.msra.mxu1 %v1892_v42 }
  0x27   :  { %1180 = vmatprep.subr.bf16.mxu0 %v1897_v43  ;;  %1221 = vmatprep.subr.bf16.mxu1 %v1900_v44 }
  0x2a   :  { %1181 = vmatpush2.bf16.msra.mxu0 %v1895_v45  ;;  %1222 = vmatpush2.bf16.msra.mxu1 %v1898_v46 }
  0x2b   :  { %1182 = vmatprep.subr.bf16.mxu0 %v1903_v47  ;;  %1223 = vmatprep.subr.bf16.mxu1 %v1906_v48 }
  0x2e   :  { %1183 = vmatpush2.bf16.msra.mxu0 %v1901_v49  ;;  %1224 = vmatpush2.bf16.msra.mxu1 %v1904_v50 }
  0x2f   :  { %1184 = vmatprep.subr.bf16.mxu0 %v1909_v51  ;;  %1225 = vmatprep.subr.bf16.mxu1 %v1912_v52 }
  0x32   :  { %1185 = vmatpush2.bf16.msra.mxu0 %v1907_v53  ;;  %1226 = vmatpush2.bf16.msra.mxu1 %v1910_v54 }
  0x33   :  { %1186 = vmatprep.subr.bf16.mxu0 %v1915_v55  ;;  %1227 = vmatprep.subr.bf16.mxu1 %v1918_v56 }
  0x36   :  { %1187 = vmatpush2.bf16.msra.mxu0 %v1913_v57  ;;  %1228 = vmatpush2.bf16.msra.mxu1 %v1916_v58 }
  0x37   :  { %1188 = vmatprep.subr.bf16.mxu0 %v1921_v59  ;;  %1229 = vmatprep.subr.bf16.mxu1 %v1924_v60 }
  0x3a   :  { %1189 = vmatpush2.bf16.msra.mxu0 %v1919_v61  ;;  %1230 = vmatpush2.bf16.msra.mxu1 %v1922_v62 }
  0x3b   :  { %1190 = vmatprep.subr.bf16.mxu0 %v1927_v63  ;;  %1231 = vmatprep.subr.bf16.mxu1 %v1930_v0 }
  0x3e   :  { %1191 = vmatpush2.bf16.msra.mxu0 %v1925_v1  ;;  %1232 = vmatpush2.bf16.msra.mxu1 %v1928_v2 }
  0x3f   :  { %1192 = vmatprep.subr.bf16.mxu0 %v1933_v3  ;;  %1233 = vmatprep.subr.bf16.mxu1 %v1936_v4 }
  0x42   :  { %1193 = vmatpush2.bf16.msra.mxu0 %v1931_v6  ;;  %1234 = vmatpush2.bf16.msra.mxu1 %v1934_v7 }
  0x43   :  { %1194 = vmatprep.subr.bf16.mxu0 %v1939_v8  ;;  %1235 = vmatprep.subr.bf16.mxu1 %v1942_v9 }
  0x46   :  { %1195 = vmatpush2.bf16.msra.mxu0 %v1937_v10  ;;  %1236 = vmatpush2.bf16.msra.mxu1 %v1940_v11 }
  0x47   :  { %1246 = vmatprep.subr.bf16.mxu0 %v1945_v12  ;;  %1287 = vmatprep.subr.bf16.mxu1 %v1948_v13 }
  0x48   :  { %14 = vsyncpa [#allocation4], 0  ;;  %v332_v14 = vlaneseq  ;;  %v2371_v18 = vld [vmem:[%s2693_s2] sm:$0xff]  ;;  %v1943_v33 = vld [vmem:[%s2694_s3 + $0x270] ss:$8 sps:$4 sm:$0xff]  }
  0x49   :  { %v1946_v36 = vld [vmem:[%s2694_s3 + $0x370] ss:$8 sps:$4 sm:$0xff]   ;;  %v1951_v37 = vld [vmem:[%s2694_s3 + $0x264] ss:$8 sps:$4 sm:$0xff]   ;;  %v2082_v40 = vmov 1.0|1.0  }
  0x4a   :  { %v2364_v15 = vshrl.u32 %v332_v14, 7  ;;  %v1954_v41 = vld [vmem:[%s2694_s3 + $0x364] ss:$8 sps:$4 sm:$0xff]   ;;  %v1949_v44 = vld [vmem:[%s2694_s3 + $0x260] ss:$8 sps:$4 sm:$0xff]  }
  0x4b   :  { %v1952_v45 = vld [vmem:[%s2694_s3 + $0x360] ss:$8 sps:$4 sm:$0xff]   ;;  %v1957_v46 = vld [vmem:[%s2694_s3 + $0x254] ss:$8 sps:$4 sm:$0xff]   ;;  %v1955_v48 = vld [vmem:[%s2694_s3 + $0x250] ss:$8 sps:$4 sm:$0xff]  }
  0x4c   :  { %v334_v16 = vsub.s32 0, %v2364_v15  ;;  %v342_v17 = vsub.s32 2, %v2364_v15  ;;  %v338_v19 = vsub.s32 1, %v2364_v15  ;;  %v346_v20 = vsub.s32 3, %v2364_v15  ;;  %v1960_v47 = vld [vmem:[%s2694_s3 + $0x354] ss:$8 sps:$4 sm:$0xff]  }
  0x4d   :  { %v354_v25 = vsub.s32 5, %v2364_v15  ;;  %v362_v26 = vsub.s32 7, %v2364_v15  ;;  %v1958_v49 = vld [vmem:[%s2694_s3 + $0x350] ss:$8 sps:$4 sm:$0xff]   ;;  %v1963_v50 = vld [vmem:[%s2694_s3 + $0x244] ss:$8 sps:$4 sm:$0xff]  }
  0x4e   :  { %v335_v21 = vrot.slane %v2371_v18, %v334_v16  ;;  %v343_v22 = vrot.slane %v2371_v18, %v342_v17  ;;  %v339_v23 = vrot.slane %v2371_v18, %v338_v19  ;;  %v347_v24 = vrot.slane %v2371_v18, %v346_v20  ;;  %v1966_v51 = vld [vmem:[%s2694_s3 + $0x344] ss:$8 sps:$4 sm:$0xff]   ;;  %v1961_v52 = vld [vmem:[%s2694_s3 + $0x240] ss:$8 sps:$4 sm:$0xff]   ;;  %v1969_v54 = vld [vmem:[%s2694_s3 + $0x234] ss:$8 sps:$4 sm:$0xff]  }
  0x4f   :  { %v355_v34 = vrot.slane %v2371_v18, %v354_v25  ;;  %v363_v35 = vrot.slane %v2371_v18, %v362_v26  ;;  %v1964_v53 = vld [vmem:[%s2694_s3 + $0x340] ss:$8 sps:$4 sm:$0xff]   ;;  %v1972_v55 = vld [vmem:[%s2694_s3 + $0x334] ss:$8 sps:$4 sm:$0xff]   ;;  %v1967_v56 = vld [vmem:[%s2694_s3 + $0x230] ss:$8 sps:$4 sm:$0xff]  }
  0x50   :  { %v1970_v57 = vld [vmem:[%s2694_s3 + $0x330] ss:$8 sps:$4 sm:$0xff]   ;;  %v1975_v58 = vld [vmem:[%s2694_s3 + $0x224] ss:$8 sps:$4 sm:$0xff]   ;;  %v1973_v60 = vld [vmem:[%s2694_s3 + $0x220] ss:$8 sps:$4 sm:$0xff]  }
  0x51   :  { %v1978_v59 = vld [vmem:[%s2694_s3 + $0x324] ss:$8 sps:$4 sm:$0xff]   ;;  %v1976_v61 = vld [vmem:[%s2694_s3 + $0x320] ss:$8 sps:$4 sm:$0xff]   ;;  %v1981_v62 = vld [vmem:[%s2694_s3 + $0x214] ss:$8 sps:$4 sm:$0xff]  }
  0x52   :  { %v1984_v63 = vld [vmem:[%s2694_s3 + $0x314] ss:$8 sps:$4 sm:$0xff]   ;;  %v1979_v0 = vld [vmem:[%s2694_s3 + $0x210] ss:$8 sps:$4 sm:$0xff]   ;;  %v1987_v2 = vld [vmem:[%s2694_s3 + $0x204] ss:$8 sps:$4 sm:$0xff]  }
  0x53   :  { %v1982_v1 = vld [vmem:[%s2694_s3 + $0x310] ss:$8 sps:$4 sm:$0xff]   ;;  %v1990_v3 = vld [vmem:[%s2694_s3 + $0x304] ss:$8 sps:$4 sm:$0xff]   ;;  %v1985_v4 = vld [vmem:[%s2694_s3 + $0x200] ss:$8 sps:$4 sm:$0xff]  }
  0x54   :  { %v1988_v6 = vld [vmem:[%s2694_s3 + $0x300] ss:$8 sps:$4 sm:$0xff]   ;;  %v1993_v7 = vld [vmem:[%s2694_s3 + $0x2f4] ss:$8 sps:$4 sm:$0xff]   ;;  %v1991_v9 = vld [vmem:[%s2694_s3 + $0x2f0] ss:$8 sps:$4 sm:$0xff]  }
  0x55   :  { %v1996_v8 = vld [vmem:[%s2694_s3 + $0x3f4] ss:$8 sps:$4 sm:$0xff]   ;;  %v1994_v10 = vld [vmem:[%s2694_s3 + $0x3f0] ss:$8 sps:$4 sm:$0xff]   ;;  %v1999_v11 = vld [vmem:[%s2694_s3 + $0x2e4] ss:$8 sps:$4 sm:$0xff]  }
  0x56   :  { %v2002_v12 = vld [vmem:[%s2694_s3 + $0x3e4] ss:$8 sps:$4 sm:$0xff]   ;;  %v1997_v13 = vld [vmem:[%s2694_s3 + $0x2e0] ss:$8 sps:$4 sm:$0xff]   ;;  %v2005_v17 = vld [vmem:[%s2694_s3 + $0x2d4] ss:$8 sps:$4 sm:$0xff]  }
  0x57   :  { %v2000_v16 = vld [vmem:[%s2694_s3 + $0x3e0] ss:$8 sps:$4 sm:$0xff]   ;;  %v2008_v19 = vld [vmem:[%s2694_s3 + $0x3d4] ss:$8 sps:$4 sm:$0xff]   ;;  %v2003_v20 = vld [vmem:[%s2694_s3 + $0x2d0] ss:$8 sps:$4 sm:$0xff]  }
  0x58   :  { %v2012_v25 = vld [vmem:[%s2694_s3 + $0x3c0] ss:$8 sps:$4 sm:$0xff]   ;;  %v2017_v26 = vld [vmem:[%s2694_s3 + $0x2b4] ss:$8 sps:$4 sm:$0xff]   ;;  %v2018_v29 = vld [vmem:[%s2694_s3 + $0x3b0] ss:$8 sps:$4 sm:$0xff]  }
  0x59   :  { %v2021_v32 = vld [vmem:[%s2694_s3 + $0x2a0] ss:$8 sps:$4 sm:$0xff]  }
  0xc5   :  { %v112_v27 = vpop.f32.mrf.mxu0  ;;  %v183_v28 = vpop.f32.mrf.mxu1 }
  0xc6   :  { %vm372_vm1 = vcmp.eq.f32.partialorder %v112_v27, %v335_v21  ;;  %vm374_vm2 = vcmp.eq.f32.partialorder %v183_v28, %v343_v22  ;;  %v2006_v21 = vld [vmem:[%s2694_s3 + $0x3d0] ss:$8 sps:$4 sm:$0xff]   ;;  %v2011_v22 = vld [vmem:[%s2694_s3 + $0x2c4] ss:$8 sps:$4 sm:$0xff]   ;;  %v2020_v27 = vld [vmem:[%s2694_s3 + $0x3b4] ss:$8 sps:$4 sm:$0xff]  }
  0xc7   :  { %vm2381_vm3 = vmpackc.low %vm372_vm1, %vm372_vm1  ;;  %v114_v30 = vpop.f32.mrf.mxu0  ;;  %v185_v31 = vpop.f32.mrf.mxu1  ;;  %v2015_v28 = vld [vmem:[%s2694_s3 + $0x2b0] ss:$8 sps:$4 sm:$0xff]   ;;  %vm2083_vm1 = vmmov 0  }
  0xc8   :  { %vm2385_vm4 = vmpackc.low %vm374_vm2, %vm374_vm2  ;;  %vm373_vm5 = vcmp.eq.f32.partialorder %v114_v30, %v339_v23  ;;  %vm375_vm6 = vcmp.eq.f32.partialorder %v185_v31, %v347_v24  ;;  %v2014_v23 = vld [vmem:[%s2694_s3 + $0x3c4] ss:$8 sps:$4 sm:$0xff]   ;;  %v2009_v24 = vld [vmem:[%s2694_s3 + $0x2c0] ss:$8 sps:$4 sm:$0xff]   ;;  %vm1598_vm2 = vcmask 57344  }
  0xc9   :  { %vm1746_vm7 = vmpackc.low %vm373_vm5, %vm373_vm5  ;;  %v2400_v38 = vpop.f32.mrf.mxu0  ;;  %v2402_v39 = vpop.f32.mrf.mxu1  ;;  %v2023_v30 = vld [vmem:[%s2694_s3 + $0x2a4] ss:$8 sps:$4 sm:$0xff]  }
  0xca   :  { %vm1750_vm8 = vmpackc.low %vm375_vm6, %vm375_vm6  ;;  %1747 = vmatprep.mubr.msk.bf16.mxu0 %vm1746_vm7, %v2082_v40  ;;  %v2026_v31 = vld [vmem:[%s2694_s3 + $0x3a4] ss:$8 sps:$4 sm:$0xff]  }
  0xcb   :  { %1751 = vmatprep.mubr.msk.bf16.mxu1 %vm1750_vm8, %v2082_v40  ;;  %1749 = vmatmul.mubr.msk.bf16.vlgmr.msra.gmra.mxu0 %vm2381_vm3, %v2082_v40  ;;  %v256_v42 = vpop.f32.mrf.mxu0  ;;  %v327_v43 = vpop.f32.mrf.mxu1 }
  0xcc   :  { %1753 = vmatmul.mubr.msk.bf16.vlgmr.msra.gmra.mxu1 %vm2385_vm4, %v2082_v40  ;;  %1247 = vmatpush1.bf16.msra.mxu0 %v1943_v33  ;;  %vm377_vm9 = vcmp.eq.f32.partialorder %v256_v42, %v355_v34  ;;  %vm379_vm10 = vcmp.eq.f32.partialorder %v327_v43, %v363_v35  ;;  %v2024_v33 = vld [vmem:[%s2694_s3 + $0x3a0] ss:$8 sps:$4 sm:$0xff]   ;;  %v2029_v34 = vld [vmem:[%s2694_s3 + $0x294] ss:$8 sps:$4 sm:$0xff]   ;;  %v2030_v42 = vld [vmem:[%s2694_s3 + $0x390] ss:$8 sps:$4 sm:$0xff]  }
  0xcd   :  { %1288 = vmatpush1.bf16.msra.mxu1 %v1946_v36  ;;  %1248 = vmatprep.subr.bf16.mxu0 %v1951_v37  ;;  %vm1754_vm11 = vmpackc.low %vm377_vm9, %vm377_vm9  ;;  %v2032_v35 = vld [vmem:[%s2694_s3 + $0x394] ss:$8 sps:$4 sm:$0xff]   ;;  %v358_v36 = vsub.s32 6, %v2364_v15  ;;  %v350_v37 = vsub.s32 4, %v2364_v15  ;;  %v2035_v43 = vld [vmem:[%s2694_s3 + $0x284] ss:$8 sps:$4 sm:$0xff]  }
  0xce   :  { %1289 = vmatprep.subr.bf16.mxu1 %v1954_v41  ;;  %vm1758_vm12 = vmpackc.low %vm379_vm10, %vm379_vm10  ;;  %1755 = vmatprep.mubr.msk.bf16.mxu0 %vm1754_vm11, %v2082_v40  ;;  %v2027_v41 = vld [vmem:[%s2694_s3 + $0x290] ss:$8 sps:$4 sm:$0xff]  }
  0xcf   :  { %1759 = vmatprep.mubr.msk.bf16.mxu1 %vm1758_vm12, %v2082_v40 }
  0xd0   :  { %1249 = vmatpush1.bf16.msra.mxu0 %v1949_v44  ;;  %v359_v44 = vrot.slane %v2371_v18, %v358_v36 }
  0xd1   :  { %1290 = vmatpush1.bf16.msra.mxu1 %v1952_v45  ;;  %1250 = vmatprep.subr.bf16.mxu0 %v1957_v46  ;;  %v2038_v45 = vld [vmem:[%s2694_s3 + $0x384] ss:$8 sps:$4 sm:$0xff]   ;;  %v351_v46 = vrot.slane %v2371_v18, %v350_v37  ;;  %v2039_v18 = vld [vmem:[%s2695_s4 + $0x38] sm:$0xff]  }
  0xd2   :  { %1291 = vmatprep.subr.bf16.mxu1 %v1960_v47  ;;  %v2033_v47 = vld [vmem:[%s2694_s3 + $0x280] ss:$8 sps:$4 sm:$0xff]   ;;  %vm378_vm13 = vcmp.eq.f32.partialorder %v2402_v39, %v359_v44  ;;  %v1782_v44 = vld [vmem:[%s2697_s6 + $0x4] ss:$0 sm:$0xff] }
  0xd3   :  { %vm376_vm14 = vcmp.eq.f32.partialorder %v2400_v38, %v351_v46  ;;  %vm1760_vm15 = vmpackc.low %vm378_vm13, %vm378_vm13  ;;  %v2040_v38 = vld [vmem:[%s2695_s4 + $0x30] sm:$0xff]   ;;  %v2041_v39 = vld [vmem:[%s2695_s4 + $0x28] sm:$0xff]  }
  0xd4   :  { %1251 = vmatpush1.bf16.msra.mxu0 %v1955_v48  ;;  %v2036_v48 = vld [vmem:[%s2694_s3 + $0x380] ss:$8 sps:$4 sm:$0xff]   ;;  %vm1756_vm0 = vmpackc.low %vm376_vm14, %vm376_vm14 }
  0xd5   :  { %1292 = vmatpush1.bf16.msra.mxu1 %v1958_v49  ;;  %1252 = vmatprep.subr.bf16.mxu0 %v1963_v50  ;;  %v2043_v49 = vld [vmem:[%s2695_s4 + $0x18] sm:$0xff]   ;;  %v2044_v50 = vld [vmem:[%s2695_s4 + $0x10] sm:$0xff]  }
  0xd6   :  { %1293 = vmatprep.subr.bf16.mxu1 %v1966_v51  ;;  %v2045_v51 = vld [vmem:[%s2695_s4 + $0x8] sm:$0xff]  }
  0xd8   :  { %1253 = vmatpush1.bf16.msra.mxu0 %v1961_v52  ;;  %v2046_v52 = vld [vmem:[%s2695_s4] sm:$0xff]  }
  0xd9   :  { %1294 = vmatpush1.bf16.msra.mxu1 %v1964_v53  ;;  %1254 = vmatprep.subr.bf16.mxu0 %v1969_v54  ;;  %v2047_v53 = vld [vmem:[%s2696_s5 + $0x38] sm:$0xff]   ;;  %v2048_v54 = vld [vmem:[%s2696_s5 + $0x30] sm:$0xff]  }
  0xda   :  { %1295 = vmatprep.subr.bf16.mxu1 %v1972_v55  ;;  %v2049_v55 = vld [vmem:[%s2696_s5 + $0x28] sm:$0xff]  }
  0xdc   :  { %1255 = vmatpush1.bf16.msra.mxu0 %v1967_v56  ;;  %v2050_v56 = vld [vmem:[%s2696_s5 + $0x20] sm:$0xff]  }
  0xdd   :  { %1296 = vmatpush1.bf16.msra.mxu1 %v1970_v57  ;;  %1256 = vmatprep.subr.bf16.mxu0 %v1975_v58  ;;  %v2051_v57 = vld [vmem:[%s2696_s5 + $0x18] sm:$0xff]   ;;  %v2052_v58 = vld [vmem:[%s2696_s5 + $0x10] sm:$0xff]  }
  0xde   :  { %1297 = vmatprep.subr.bf16.mxu1 %v1978_v59 }
  0xe0   :  { %1257 = vmatpush1.bf16.msra.mxu0 %v1973_v60 }
  0xe1   :  { %1298 = vmatpush1.bf16.msra.mxu1 %v1976_v61  ;;  %1258 = vmatprep.subr.bf16.mxu0 %v1981_v62 }
  0xe2   :  { %1299 = vmatprep.subr.bf16.mxu1 %v1984_v63 }
  0xe4   :  { %1259 = vmatpush1.bf16.msra.mxu0 %v1979_v0 }
  0xe5   :  { %1300 = vmatpush1.bf16.msra.mxu1 %v1982_v1  ;;  %1260 = vmatprep.subr.bf16.mxu0 %v1987_v2 }
  0xe6   :  { %1301 = vmatprep.subr.bf16.mxu1 %v1990_v3 }
  0xe8   :  { %1261 = vmatpush1.bf16.msra.mxu0 %v1985_v4 }
  0xe9   :  { %1302 = vmatpush1.bf16.msra.mxu1 %v1988_v6  ;;  %1262 = vmatprep.subr.bf16.mxu0 %v1993_v7 }
  0xea   :  { %1303 = vmatprep.subr.bf16.mxu1 %v1996_v8 }
  0xec   :  { %1263 = vmatpush2.bf16.msra.mxu0 %v1991_v9  ;;  %v1762_v9 = vld [vmem:[%s2697_s6] ss:$0 sm:$0xff] }
  0xed   :  { %1304 = vmatpush2.bf16.msra.mxu1 %v1994_v10  ;;  %1264 = vmatprep.subr.bf16.mxu0 %v1999_v11 }
  0xee   :  { %1305 = vmatprep.subr.bf16.mxu1 %v2002_v12 }
  0xf0   :  { %1265 = vmatpush2.bf16.msra.mxu0 %v1997_v13 }
  0xf1   :  { %1306 = vmatpush2.bf16.msra.mxu1 %v2000_v16  ;;  %1266 = vmatprep.subr.bf16.mxu0 %v2005_v17 }
  0xf2   :  { %1307 = vmatprep.subr.bf16.mxu1 %v2008_v19 }
  0xf4   :  { %1267 = vmatpush2.bf16.msra.mxu0 %v2003_v20 }
  0xf5   :  { %1308 = vmatpush2.bf16.msra.mxu1 %v2006_v21  ;;  %1268 = vmatprep.subr.bf16.mxu0 %v2011_v22 }
  0xf6   :  { %1309 = vmatprep.subr.bf16.mxu1 %v2014_v23 }
  0xf8   :  { %1269 = vmatpush2.bf16.msra.mxu0 %v2009_v24 }
  0xf9   :  { %1310 = vmatpush2.bf16.msra.mxu1 %v2012_v25  ;;  %1270 = vmatprep.subr.bf16.mxu0 %v2017_v26  ;;  %v2053_v25 = vld [vmem:[%s2696_s5 + $0x8] sm:$0xff]   ;;  %v2054_v26 = vld [vmem:[%s2696_s5] sm:$0xff]  }
  0xfa   :  { %1311 = vmatprep.subr.bf16.mxu1 %v2020_v27  ;;  %v1763_v27 = vld [vmem:[%s2697_s6 + $0x1] ss:$0 sm:$0xff] }
  0xfc   :  { %1271 = vmatpush2.bf16.msra.mxu0 %v2015_v28 }
  0xfd   :  { %1312 = vmatpush2.bf16.msra.mxu1 %v2018_v29  ;;  %1272 = vmatprep.subr.bf16.mxu0 %v2023_v30 }
  0xfe   :  { %1313 = vmatprep.subr.bf16.mxu1 %v2026_v31 }
 0x100   :  { %1273 = vmatpush2.bf16.msra.mxu0 %v2021_v32 }
 0x101   :  { %1314 = vmatpush2.bf16.msra.mxu1 %v2024_v33  ;;  %1274 = vmatprep.subr.bf16.mxu0 %v2029_v34 }
 0x102   :  { %1315 = vmatprep.subr.bf16.mxu1 %v2032_v35 }
 0x104   :  { %1275 = vmatpush2.bf16.msra.mxu0 %v2027_v41 }
 0x105   :  { %1316 = vmatpush2.bf16.msra.mxu1 %v2030_v42  ;;  %1276 = vmatprep.subr.bf16.mxu0 %v2035_v43  ;;  %v1781_v42 = vld [vmem:[%s2697_s6 + $0x3] ss:$0 sm:$0xff] }
 0x106   :  { %1317 = vmatprep.subr.bf16.mxu1 %v2038_v45 }
 0x108   :  { %1277 = vmatpush2.bf16.msra.mxu0 %v2033_v47  ;;  %v1783_v47 = vld [vmem:[%s2697_s6 + $0x5] ss:$0 sm:$0xff] }
 0x109   :  { %1318 = vmatpush2.bf16.msra.mxu1 %v2036_v48  ;;  %1803 = vmatprep.subr.bf16.mxu0 %v2081_v5 }
 0x10a   :  { %1823 = vmatprep.subr.bf16.mxu1 %v2081_v5 }
 0x10b   :  { %1757 = vmatmul.mubr.msk.bf16.vlgmr.msra.gmra.mxu0 %vm1756_vm0, %v2082_v40 }
 0x10c   :  { %1761 = vmatmul.mubr.msk.bf16.vlgmr.msra.gmra.mxu1 %vm1760_vm15, %v2082_v40  ;;  %1804 = vmatpush3.bf16.msra.mxu0 %v2039_v18  ;;  %v2042_v40 = vld [vmem:[%s2695_s4 + $0x20] sm:$0xff]  }
 0x10d   :  { %1805 = vmatprep.subr.bf16.mxu0 %v2081_v5  ;;  %1819 = vmatprep.mubr.msk.bf16.mxu0 %vm2083_vm1, %v2081_v5 }
 0x10e   :  { %1839 = vmatprep.mubr.msk.bf16.mxu1 %vm2083_vm1, %v2081_v5  ;;  %1824 = vmatpush3.bf16.msra.mxu1 %v2047_v53 }
 0x10f   :  { %1825 = vmatprep.subr.bf16.mxu1 %v2081_v5 }
 0x110   :  { %1806 = vmatpush3.bf16.msra.mxu0 %v2040_v38 }
 0x111   :  { %1807 = vmatprep.subr.bf16.mxu0 %v2081_v5 }
 0x112   :  { %1826 = vmatpush3.bf16.msra.mxu1 %v2048_v54 }
 0x113   :  { %1827 = vmatprep.subr.bf16.mxu1 %v2081_v5 }
 0x114   :  { %1808 = vmatpush3.bf16.msra.mxu0 %v2041_v39 }
 0x115   :  { %1809 = vmatprep.subr.bf16.mxu0 %v2081_v5 }
 0x116   :  { %1828 = vmatpush3.bf16.msra.mxu1 %v2049_v55 }
 0x117   :  { %1829 = vmatprep.subr.bf16.mxu1 %v2081_v5 }
 0x118   :  { %1810 = vmatpush3.bf16.msra.mxu0 %v2042_v40 }
 0x119   :  { %1811 = vmatprep.subr.bf16.mxu0 %v2081_v5 }
 0x11a   :  { %1830 = vmatpush3.bf16.msra.mxu1 %v2050_v56  ;;  %v1592_v56 = vand.u32 127, %v332_v14 }
 0x11b   :  { %1831 = vmatprep.subr.bf16.mxu1 %v2081_v5 }
 0x11c   :  { %1812 = vmatpush3.bf16.msra.mxu0 %v2043_v49 }
 0x11d   :  { %1813 = vmatprep.subr.bf16.mxu0 %v2081_v5 }
 0x11e   :  { %1832 = vmatpush3.bf16.msra.mxu1 %v2051_v57  ;;  %v1595_v57 = vsub.s32 %v1592_v56, %v2364_v15 }
 0x11f   :  { %1833 = vmatprep.subr.bf16.mxu1 %v2081_v5 }
 0x120   :  { %1814 = vmatpush3.bf16.msra.mxu0 %v2044_v50  ;;  %v1582_v50 = vstv %s2698_s7 }
 0x121   :  { %1815 = vmatprep.subr.bf16.mxu0 %v2081_v5 }
 0x122   :  { %1834 = vmatpush3.bf16.msra.mxu1 %v2052_v58 }
 0x123   :  { %1835 = vmatprep.subr.bf16.mxu1 %v2081_v5 }
 0x124   :  { %1816 = vmatpush3.bf16.msra.mxu0 %v2045_v51 }
 0x125   :  { %1817 = vmatprep.subr.bf16.mxu0 %v2081_v5 }
 0x126   :  { %1836 = vmatpush3.bf16.msra.mxu1 %v2053_v25 }
 0x127   :  { %1837 = vmatprep.subr.bf16.mxu1 %v2081_v5  ;;  %v1772_v5 = vld [vmem:[%s2697_s6 + $0x2] ss:$0 sm:$0xff]  ;;  %s2084_s6 = smov [#allocation3]  }
 0x128   :  { %1818 = vmatpush3.bf16.msra.mxu0 %v2046_v52  ;;  %s1606_s27 = sshll.u32 %s2084_s6, 4  ;;  %s1607_s27 = int_to_ptr.vmem [resolvable:$true] %s1606_s27 }
 0x129   :  { %s2059_s28 = scalar_lea.vmem %s1607_s27, 16  ;;  %s2063_s7 = scalar_lea.vmem %s1607_s27, 32 }
 0x12a   :  { %1838 = vmatpush3.bf16.msra.mxu1 %v2054_v26  ;;  %p2060_p0 = scmp.ne.s32.totalorder %s1607_s27, %s2059_s28  ;;  %p2064_p1 = scmp.lt.s32.totalorder %s1607_s27, %s1607_s27 }
 0x12b   :  { %p2065_p2 = scmp.lt.s32.totalorder %s2063_s7, %s2059_s28 }
 0x12d   :  { %p2066_p3 = por %p2065_p2, %p2064_p1 }
 0x12f   :  { %p2067_p4 = pnand %p2066_p3, %p2060_p0 }
 0x18b   :  { %v1198_v59 = vpop.f32.mrf.mxu0 }
 0x18c   :  { %v1239_v60 = vpop.f32.mrf.mxu1 }
 0x18d   :  { %v1200_v61 = vpop.f32.mrf.mxu0  ;;  %v1240_v4 = vadd.f32 %v1239_v60, %v1198_v59 }
 0x18e   :  { %v1241_v62 = vpop.f32.mrf.mxu1 }
 0x18f   :  { %v1242_v63 = vadd.f32 %v1241_v62, %v1200_v61  ;;  %v1202_v0 = vpop.f32.mrf.mxu0 }
 0x190   :  { %v1243_v1 = vpop.f32.mrf.mxu1 }
 0x191   :  { %v1203_v2 = vpop.f32.mrf.mxu0 }
 0x192   :  { %v1244_v3 = vpop.f32.mrf.mxu1 }
 0x1cb   :  { %v1280_v6 = vpop.f32.mrf.mxu0 }
 0x1cc   :  { %v1281_v7 = vadd.f32 %v1280_v6, %v1240_v4  ;;  %v1321_v8 = vpop.f32.mrf.mxu1 }
 0x1cd   :  { %v1282_v10 = vpop.f32.mrf.mxu0 }
 0x1ce   :  { %v1322_v11 = vadd.f32 %v1321_v8, %v1281_v7  ;;  %v1283_v12 = vadd.f32 %v1282_v10, %v1242_v63  ;;  %v1323_v13 = vpop.f32.mrf.mxu1 }
 0x1cf   :  { %v1284_v16 = vpop.f32.mrf.mxu0 }
 0x1d0   :  { %v1338_v17 = vadd.f32 %v1762_v9, %v1322_v11  ;;  %v1324_v19 = vadd.f32 %v1323_v13, %v1283_v12  ;;  %v1325_v20 = vpop.f32.mrf.mxu1 }
 0x1d1   :  { %v1285_v21 = vpop.f32.mrf.mxu0 }
 0x1d2   :  { %v1339_v22 = vmax.f32 %v1338_v17, 0.0  ;;  %v1326_v23 = vpop.f32.mrf.mxu1  ;;  %v1565_v35 = vmul.f32 0.5, %v1324_v19  ;;  %v1577_v40 = vmul.f32 %v1783_v47, %v1324_v19 }
 0x1d4   :  { %v1340_v24 = vpack.c.bf16 %v1339_v22, %v1339_v22  ;;  %v1566_v37 = vmul.f32 %v1565_v35, %v1324_v19 }
 0x1d6   :  { %1820 = vmatmul.mubr.bf16.vlgmr.msra.gmra.mxu0 %v1340_v24  ;;  %v1571_v18 = vmul.f32 %v1782_v44, %v1566_v37 }
 0x296   :  { %v1443_v28 = vpop.f32.mrf.mxu0 }
 0x297   :  { %v1444_v29 = vadd.f32 %v1763_v27, %v1443_v28 }
 0x298   :  { %v1821_v30 = vpop.f32.mrf.mxu0 }
 0x299   :  { %v1449_v31 = vmax.f32 %v1444_v29, 0.0 }
 0x29a   :  { %v1446_v32 = vpop.f32.mrf.mxu0 }
 0x29b   :  { %v1450_v33 = vpack.c.bf16 %v1449_v31, %v1449_v31 }
 0x29c   :  { %v1822_v34 = vpop.f32.mrf.mxu0 }
 0x29d   :  { %1840 = vmatmul.mubr.bf16.vlgmr.msra.gmra.mxu1 %v1450_v33 }
 0x35d   :  { %v1553_v36 = vpop.f32.mrf.mxu1 }
 0x35e   :  { %v1554_v41 = vadd.f32 %v1772_v5, %v1553_v36 }
 0x35f   :  { %v1841_v43 = vpop.f32.mrf.mxu1 }
 0x360   :  { %v1559_v45 = vmax.f32 %v1554_v41, 0.0 }
 0x361   :  { %v1556_v46 = vpop.f32.mrf.mxu1 }
 0x362   :  { %v1564_v48 = vmul.f32 %v1781_v42, %v1559_v45 }
 0x363   :  { %v1842_v38 = vpop.f32.mrf.mxu1 }
 0x364   :  { %v1572_v39 = vadd.f32 %v1571_v18, %v1564_v48 }
 0x366   :  { %v1578_v49 = vadd.f32 %v1577_v40, %v1572_v39 }
 0x368   :  { %1579 = vadd.xlane.f32.xlu0 %v1578_v49 }
 0x3f1   :  { %v1580_v51 = vpop.xlane.xlu0 %1579 }
 0x3f2   :  { %v1583_v52 = vadd.f32 %v1582_v50, %v1580_v51 }
 0x3f4   :  { %v1784_v53 = vmul.f32 -1.442695, %v1583_v52 }
 0x3f6   :  { %2055 = vpow2.f32 %v1784_v53 }
 0x403   :  { %v2056_v54 = vpop.eup %2055 }
 0x404   :  { %v1587_v55 = vadd.f32 1.0, %v2056_v54 }
 0x406   :  { %2057 = vrcp.f32 %v1587_v55 }
 0x413   :  { %v2058_v58 = vpop.eup %2057 }
 0x414   :  { %v1596_v59 = vrot.slane %v2058_v58, %v1595_v57 }
 0x416   :  { %1599 = vst.msk [vmem:[#allocation3] sm:$0x1] %vm1598_vm2, %v1596_v59 }
 0x417   :  { %2070 = shalt.err (!%p2067_p4)
}
 0x418   :  { %1609 = dma.vmem_to_hbm [thread:$0]  %s1607_s27, 16, %s2699_s8, [#allocation4]  }
 0x419   :  { %2079 = dma.done.wait [#allocation4], 16  }
 0x41a   :  { %2080 = vsyncadd [#allocation4], 4294967280 }
 0x41b   :  { %1613 = vsyncpa [#allocation4], 1 }

</bundles_post_ra>
